<compile_context>
chip_gen: v6e
topology: v6e:2x2x1
jax: 0.10.0
libtpu: 0.0.40
codegen_flags: <defaults>
</compile_context>

<pallas_src>
import jax
import jax.numpy as jnp
from jax.experimental import pallas as pl
from jax.experimental.pallas import tpu as pltpu


# ----------------------------------------------------------------------------
# Kernel: three fused matmul + bias (+ LeakyReLU) stages on one batch tile.
# ----------------------------------------------------------------------------
def mlp_kernel(x_ref, w1_ref, b1_ref, w2_ref, b2_ref, we_ref, be_ref, o_ref):
    slope = jnp.float32(0.001)

    # In-kernel cast to the weight compute dtype (no-op for f32 weights).
    x = x_ref[...].astype(w1_ref.dtype)                       # (tile_b, F)

    # block 1: (BN1 folded) dense1 -> leaky_relu
    h = jnp.dot(x, w1_ref[...], preferred_element_type=jnp.float32) + b1_ref[...]
    h = jnp.where(h > 0, h, slope * h)

    # block 2: (BN2 folded) dense2 -> leaky_relu
    h = jnp.dot(h.astype(w2_ref.dtype), w2_ref[...],
                preferred_element_type=jnp.float32) + b2_ref[...]
    h = jnp.where(h > 0, h, slope * h)

    # end block: (BN_end folded) dense_end, true num_targets-wide output
    o_ref[...] = (jnp.dot(h.astype(we_ref.dtype), we_ref[...],
                          preferred_element_type=jnp.float32)
                  + be_ref[...]).astype(o_ref.dtype)


# ----------------------------------------------------------------------------
# Parameter glue (host/wrapper side).
# ----------------------------------------------------------------------------
def _round_up(x, m):
    return (x + m - 1) // m * m


def _bn_scale_shift(gamma, beta, running_mean, running_var, eps=1e-5):
    scale = gamma / jnp.sqrt(running_var + eps)
    shift = beta - running_mean * scale
    return scale[None, :], shift[None, :]                     # (1, F)


def _weight_norm(v, g):
    # v: [out, in], g: [out]  ->  W = g * v / ||v||_2 (norm over input dim)
    norm = jnp.sqrt(jnp.sum(v * v, axis=1, keepdims=True))
    return g[:, None] * v / norm                              # [out, in]


def fuse_params(p, compute_dtype=jnp.float32):
    """Fold BN scale/shift into the following linear (no output padding)."""
    def fold(s, t, w, b):
        wf = s.reshape(-1, 1) * w                             # (in, out)
        bf = t @ w + b                                        # (1, out)
        return wf, bf

    w1, b1 = fold(p["s1"], p["t1"], p["w1"], p["b1"])
    w2, b2 = fold(p["s2"], p["t2"], p["w2"], p["b2"])
    we, be = fold(p["se"], p["te"], p["we"], p["be"])

    return dict(
        w1=w1.astype(compute_dtype), b1=b1.astype(jnp.float32),
        w2=w2.astype(compute_dtype), b2=b2.astype(jnp.float32),
        we=we.astype(compute_dtype), be=be.astype(jnp.float32),
    )


# ----------------------------------------------------------------------------
# Wrapper: batch-tiled pallas_call with resident weights, streamed x / out.
# ----------------------------------------------------------------------------
def model_forward(x, fused, *, tile_b=2048):
    B, F = x.shape
    H = fused["w1"].shape[1]
    T = fused["we"].shape[1]

    # --- batch tile selection -----------------------------------------------
    lane = lambda n: _round_up(n, 128)
    # VMEM bytes per batch row (lane-padded): double-buffered x + out streams
    # plus the two hidden activations.
    stream_row = 4 * (lane(F) + lane(T))
    act_row = 4 * 2 * lane(H)
    vmem_budget = 40 << 20                     # comfortably below v7x's 64 MiB
    max_tile = max(8, (vmem_budget - (4 << 20)) // (2 * stream_row + act_row))

    tile_b = max(8, min(int(tile_b), max_tile, _round_up(B, 8)))
    # v7x megacore: ensure >= 2 grid steps when the batch is big enough that
    # splitting it across the two TensorCores is worthwhile.
    if B <= tile_b and B > 16:
        tile_b = min(tile_b, _round_up(pl.cdiv(B, 2), 8))
    tile_b = _round_up(tile_b, 8)
    num_tiles = pl.cdiv(B, tile_b)             # ragged last block handled by Pallas

    vmem_limit = int(min(max(2 * tile_b * stream_row + tile_b * act_row + (6 << 20),
                             32 << 20),
                         48 << 20))

    out = pl.pallas_call(
        mlp_kernel,
        out_shape=jax.ShapeDtypeStruct((B, T), jnp.float32),
        grid_spec=pltpu.PrefetchScalarGridSpec(
            num_scalar_prefetch=0,
            grid=(num_tiles,),
            in_specs=[
                pl.BlockSpec((tile_b, F), lambda i: (i, 0)),   # x tile (streamed)
                pl.BlockSpec((F, H), lambda i: (0, 0)),        # resident weights
                pl.BlockSpec((1, H), lambda i: (0, 0)),
                pl.BlockSpec((H, H), lambda i: (0, 0)),
                pl.BlockSpec((1, H), lambda i: (0, 0)),
                pl.BlockSpec((H, T), lambda i: (0, 0)),
                pl.BlockSpec((1, T), lambda i: (0, 0)),
            ],
            # True-width output block (last dim == full array dim): masked vst
            # in VMEM, but the HBM writeback is 4*T B/row instead of 512 B/row.
            out_specs=pl.BlockSpec((tile_b, T), lambda i: (i, 0)),
        ),
        compiler_params=pltpu.CompilerParams(
            dimension_semantics=("parallel",),                 # megacore on v7x
            vmem_limit_bytes=vmem_limit,
        ),
    )(x, fused["w1"], fused["b1"], fused["w2"], fused["b2"],
      fused["we"], fused["be"])

    return out


# ----------------------------------------------------------------------------
# Raw (unfused) parameter construction + pure-JAX reference.
# ----------------------------------------------------------------------------
def make_params(key, num_features, hidden_size, num_targets):
    ks = jax.random.split(key, 16)
    f32 = jnp.float32

    def bn(k, dim):
        k1, k2, k3, k4 = jax.random.split(k, 4)
        gamma = 1.0 + 0.1 * jax.random.normal(k1, (dim,), f32)
        beta = 0.1 * jax.random.normal(k2, (dim,), f32)
        mean = 0.1 * jax.random.normal(k3, (dim,), f32)
        var = 1.0 + 0.1 * jax.random.uniform(k4, (dim,), f32)
        return _bn_scale_shift(gamma, beta, mean, var)

    def dense(kv, kg, kb, d_in, d_out):
        v = jax.random.normal(kv, (d_out, d_in), f32) / jnp.sqrt(f32(d_in))
        g = 1.0 + 0.1 * jax.random.normal(kg, (d_out,), f32)
        w = _weight_norm(v, g).T                               # [in, out]
        b = 0.1 * jax.random.normal(kb, (d_out,), f32)[None, :]
        return w, b

    s1, t1 = bn(ks[0], num_features)
    s2, t2 = bn(ks[1], hidden_size)
    se, te = bn(ks[2], hidden_size)
    w1, b1 = dense(ks[3], ks[4], ks[5], num_features, hidden_size)
    w2, b2 = dense(ks[6], ks[7], ks[8], hidden_size, hidden_size)
    we, be = dense(ks[9], ks[10], ks[11], hidden_size, num_targets)

    return dict(s1=s1, t1=t1, w1=w1, b1=b1,
                s2=s2, t2=t2, w2=w2, b2=b2,
                se=se, te=te, we=we, be=be)


def reference_forward(x, p):
    slope = 0.001
    h = x * p["s1"] + p["t1"]
    h = h @ p["w1"] + p["b1"]
    h = jnp.where(h > 0, h, slope * h)
    h = h * p["s2"] + p["t2"]
    h = h @ p["w2"] + p["b2"]
    h = jnp.where(h > 0, h, slope * h)
    h = h * p["se"] + p["te"]
    return h @ p["we"] + p["be"]


if __name__ == "__main__":
    num_features, hidden_size, num_targets = 16, 32, 4

    key = jax.random.PRNGKey(0)
    kx, kp = jax.random.split(key)
    params = make_params(kp, num_features, hidden_size, num_targets)
    fused_f32 = fuse_params(params, jnp.float32)

    # --- small batch (single tile) -----------------------------------------
    batch = 8
    x = jax.random.normal(kx, (batch, num_features), jnp.float32)
    out = jax.block_until_ready(model_forward(x, fused_f32, tile_b=256))
    ref = reference_forward(x, params)
    assert out.shape == (batch, num_targets)
    assert jnp.allclose(out, ref, atol=1e-3, rtol=1e-3), "f32 mismatch (small batch)"

    # --- larger batch: multi-tile grid + ragged last block ------------------
    batch2 = 600
    x2 = jax.random.normal(jax.random.PRNGKey(1), (batch2, num_features), jnp.float32)
    out2 = jax.block_until_ready(model_forward(x2, fused_f32, tile_b=256))
    ref2 = reference_forward(x2, params)
    assert out2.shape == (batch2, num_targets)
    assert jnp.allclose(out2, ref2, atol=1e-3, rtol=1e-3), "f32 mismatch (tiled batch)"

    # --- batch not a multiple of 8 / tile: clipped edge-block DMAs ----------
    batch3 = 37
    x3 = jax.random.normal(jax.random.PRNGKey(2), (batch3, num_features), jnp.float32)
    out3 = jax.block_until_ready(model_forward(x3, fused_f32))
    ref3 = reference_forward(x3, params)
    assert out3.shape == (batch3, num_targets)
    assert jnp.allclose(out3, ref3, atol=1e-3, rtol=1e-3), "f32 mismatch (ragged batch)"

    # --- optional bf16 weight path (x stays f32 in HBM, cast in-kernel) -----
    fused_bf16 = fuse_params(params, jnp.bfloat16)
    out4 = jax.block_until_ready(model_forward(x2, fused_bf16, tile_b=256))
    assert out4.shape == (batch2, num_targets)
    assert jnp.allclose(out4, ref2, atol=2.5e-1, rtol=1e-1), "bf16 mismatch"

    print("KERNEL_OK")
</pallas_src>

<mosaic_0001>
module attributes {stable_mosaic.version = 11 : i64} {
  func.func @mlp_kernel(%arg0: i32, %arg1: memref<8x16xf32, #tpu.memory_space<vmem>>, %arg2: memref<16x32xf32, #tpu.memory_space<vmem>>, %arg3: memref<1x32xf32, #tpu.memory_space<vmem>>, %arg4: memref<32x32xf32, #tpu.memory_space<vmem>>, %arg5: memref<1x32xf32, #tpu.memory_space<vmem>>, %arg6: memref<32x4xf32, #tpu.memory_space<vmem>>, %arg7: memref<1x4xf32, #tpu.memory_space<vmem>>, %arg8: memref<8x4xf32, #tpu.memory_space<vmem>>) attributes {dimension_semantics = [#tpu.dimension_semantics<parallel>], iteration_bounds = array<i64: 1>, scalar_prefetch = 0 : i64, scratch_operands = 0 : i64, tpu.core_type = #tpu.core_type<tc>, window_params = [{transform_indices = @transform_0, window_bounds = array<i64: 8, 16>}, {pipeline_mode = #tpu.pipeline_mode<synchronous>, transform_indices = @transform_1, window_bounds = array<i64: 16, 32>}, {pipeline_mode = #tpu.pipeline_mode<synchronous>, transform_indices = @transform_2, window_bounds = array<i64: 1, 32>}, {pipeline_mode = #tpu.pipeline_mode<synchronous>, transform_indices = @transform_3, window_bounds = array<i64: 32, 32>}, {pipeline_mode = #tpu.pipeline_mode<synchronous>, transform_indices = @transform_4, window_bounds = array<i64: 1, 32>}, {pipeline_mode = #tpu.pipeline_mode<synchronous>, transform_indices = @transform_5, window_bounds = array<i64: 32, 4>}, {pipeline_mode = #tpu.pipeline_mode<synchronous>, transform_indices = @transform_6, window_bounds = array<i64: 1, 4>}, {transform_indices = @transform_7, window_bounds = array<i64: 8, 4>}]} {
    %c0 = arith.constant 0 : index
    %c0_0 = arith.constant 0 : index
    %0 = vector.load %arg1[%c0, %c0_0] : memref<8x16xf32, #tpu.memory_space<vmem>>, vector<8x16xf32>
    %c0_1 = arith.constant 0 : index
    %c0_2 = arith.constant 0 : index
    %1 = vector.load %arg2[%c0_1, %c0_2] : memref<16x32xf32, #tpu.memory_space<vmem>>, vector<16x32xf32>
    %cst = arith.constant dense<0.000000e+00> : vector<8x32xf32>
    %2 = tpu.matmul %0, %1, %cst {dimension_numbers = #tpu.dot_dimension_numbers<[1], [0], [0], [1], [0, 0, 1, 1], [], []>} : vector<8x16xf32>, vector<16x32xf32>, vector<8x32xf32> -> vector<8x32xf32>
    %c0_3 = arith.constant 0 : index
    %c0_4 = arith.constant 0 : index
    %3 = vector.load %arg3[%c0_3, %c0_4] : memref<1x32xf32, #tpu.memory_space<vmem>>, vector<1x32xf32>
    %4 = vector.broadcast %3 : vector<1x32xf32> to vector<8x32xf32>
    %5 = arith.addf %2, %4 : vector<8x32xf32>
    %cst_5 = arith.constant 0.000000e+00 : f32
    %6 = vector.broadcast %cst_5 : f32 to vector<8x32xf32>
    %7 = arith.cmpf ogt, %5, %6 : vector<8x32xf32>
    %cst_6 = arith.constant 1.000000e-03 : f32
    %8 = vector.broadcast %cst_6 : f32 to vector<8x32xf32>
    %9 = arith.mulf %8, %5 : vector<8x32xf32>
    %10 = arith.select %7, %5, %9 : vector<8x32xi1>, vector<8x32xf32>
    %c0_7 = arith.constant 0 : index
    %c0_8 = arith.constant 0 : index
    %11 = vector.load %arg4[%c0_7, %c0_8] : memref<32x32xf32, #tpu.memory_space<vmem>>, vector<32x32xf32>
    %cst_9 = arith.constant dense<0.000000e+00> : vector<8x32xf32>
    %12 = tpu.matmul %10, %11, %cst_9 {dimension_numbers = #tpu.dot_dimension_numbers<[1], [0], [0], [1], [0, 0, 1, 1], [], []>} : vector<8x32xf32>, vector<32x32xf32>, vector<8x32xf32> -> vector<8x32xf32>
    %c0_10 = arith.constant 0 : index
    %c0_11 = arith.constant 0 : index
    %13 = vector.load %arg5[%c0_10, %c0_11] : memref<1x32xf32, #tpu.memory_space<vmem>>, vector<1x32xf32>
    %14 = vector.broadcast %13 : vector<1x32xf32> to vector<8x32xf32>
    %15 = arith.addf %12, %14 : vector<8x32xf32>
    %cst_12 = arith.constant 0.000000e+00 : f32
    %16 = vector.broadcast %cst_12 : f32 to vector<8x32xf32>
    %17 = arith.cmpf ogt, %15, %16 : vector<8x32xf32>
    %cst_13 = arith.constant 1.000000e-03 : f32
    %18 = vector.broadcast %cst_13 : f32 to vector<8x32xf32>
    %19 = arith.mulf %18, %15 : vector<8x32xf32>
    %20 = arith.select %17, %15, %19 : vector<8x32xi1>, vector<8x32xf32>
    %c0_14 = arith.constant 0 : index
    %c0_15 = arith.constant 0 : index
    %21 = vector.load %arg6[%c0_14, %c0_15] : memref<32x4xf32, #tpu.memory_space<vmem>>, vector<32x4xf32>
    %cst_16 = arith.constant dense<0.000000e+00> : vector<8x4xf32>
    %22 = tpu.matmul %20, %21, %cst_16 {dimension_numbers = #tpu.dot_dimension_numbers<[1], [0], [0], [1], [0, 0, 1, 1], [], []>} : vector<8x32xf32>, vector<32x4xf32>, vector<8x4xf32> -> vector<8x4xf32>
    %c0_17 = arith.constant 0 : index
    %c0_18 = arith.constant 0 : index
    %23 = vector.load %arg7[%c0_17, %c0_18] : memref<1x4xf32, #tpu.memory_space<vmem>>, vector<1x4xf32>
    %24 = vector.broadcast %23 : vector<1x4xf32> to vector<8x4xf32>
    %25 = arith.addf %22, %24 : vector<8x4xf32>
    %c0_19 = arith.constant 0 : index
    %c0_20 = arith.constant 0 : index
    %26 = vector.load %arg8[%c0_19, %c0_20] : memref<8x4xf32, #tpu.memory_space<vmem>>, vector<8x4xf32>
    tpu.vector_store %arg8[%c0_19, %c0_20], %25 {strides = array<i32>} : memref<8x4xf32, #tpu.memory_space<vmem>>, vector<8x4xf32>,
    return
  }
  func.func @transform_0(%arg0: i32) -> (i32, i32) {
    %c0_i32 = arith.constant 0 : i32
    %c0_i32_0 = arith.constant 0 : i32
    return %arg0, %c0_i32 : i32, i32
  }
  func.func @transform_1(%arg0: i32) -> (i32, i32) {
    %c0_i32 = arith.constant 0 : i32
    %c0_i32_0 = arith.constant 0 : i32
    %c0_i32_1 = arith.constant 0 : i32
    return %c0_i32, %c0_i32_0 : i32, i32
  }
  func.func @transform_2(%arg0: i32) -> (i32, i32) {
    %c0_i32 = arith.constant 0 : i32
    %c0_i32_0 = arith.constant 0 : i32
    %c0_i32_1 = arith.constant 0 : i32
    return %c0_i32, %c0_i32_0 : i32, i32
  }
  func.func @transform_3(%arg0: i32) -> (i32, i32) {
    %c0_i32 = arith.constant 0 : i32
    %c0_i32_0 = arith.constant 0 : i32
    %c0_i32_1 = arith.constant 0 : i32
    return %c0_i32, %c0_i32_0 : i32, i32
  }
  func.func @transform_4(%arg0: i32) -> (i32, i32) {
    %c0_i32 = arith.constant 0 : i32
    %c0_i32_0 = arith.constant 0 : i32
    %c0_i32_1 = arith.constant 0 : i32
    return %c0_i32, %c0_i32_0 : i32, i32
  }
  func.func @transform_5(%arg0: i32) -> (i32, i32) {
    %c0_i32 = arith.constant 0 : i32
    %c0_i32_0 = arith.constant 0 : i32
    %c0_i32_1 = arith.constant 0 : i32
    return %c0_i32, %c0_i32_0 : i32, i32
  }
  func.func @transform_6(%arg0: i32) -> (i32, i32) {
    %c0_i32 = arith.constant 0 : i32
    %c0_i32_0 = arith.constant 0 : i32
    %c0_i32_1 = arith.constant 0 : i32
    return %c0_i32, %c0_i32_0 : i32, i32
  }
  func.func @transform_7(%arg0: i32) -> (i32, i32) {
    %c0_i32 = arith.constant 0 : i32
    %c0_i32_0 = arith.constant 0 : i32
    return %arg0, %c0_i32 : i32, i32
  }
}

</mosaic_0001>

<bundles_post_ra>
// kernel: tpu_custom_call.1
= control target key start
LH: loop header
LB: loop body
LE: loop exit
PB: predicated region body
PF: predicated region fallthrough
CT: control target
= control target key end

     0   :  { %12 = vsyncpa [#allocation3], 0  ;;  %s510_s0 = inlined_call_operand.vmem [shape: f32[8,16], index: 0, kind: input, shape index: {}]   ;;  %s511_s1 = inlined_call_operand.hbm [shape: f32[16,32], index: 1, kind: input, shape index: {}]   ;;  %s512_s2 = inlined_call_operand.vmem [shape: f32[1,32], index: 2, kind: input, shape index: {}]   ;;  %s513_s3 = inlined_call_operand.vmem [shape: f32[32,32], index: 3, kind: input, shape index: {}]   ;;  %s514_s4 = inlined_call_operand.hbm [shape: f32[1,32], index: 4, kind: input, shape index: {}]   ;;  %s515_s5 = inlined_call_operand.vmem [shape: f32[32,4], index: 5, kind: input, shape index: {}]   ;;  %s516_s6 = inlined_call_operand.vmem [shape: f32[1,4], index: 6, kind: input, shape index: {}]   ;;  %s517_s7 = inlined_call_operand.vmem [shape: f32[8,4], index: 7, kind: output, shape index: {}]  }
   0x1   :  { %13 = vsyncpa [#allocation5], 0  ;;  %s417_s24 = smov [#allocation2]  }
   0x2   :  { %s21_s25 = sshll.u32 %s417_s24, 4  ;;  %s22_s25 = int_to_ptr.vmem [resolvable:$true] %s21_s25 }
   0x3   :  { %s381_s26 = scalar_lea.vmem %s22_s25, 256  ;;  %p386_p1 = scmp.lt.s32.totalorder %s22_s25, %s22_s25 }
   0x4   :  { %p382_p0 = scmp.ne.s32.totalorder %s22_s25, %s381_s26  ;;  %p387_p2 = scmp.lt.s32.totalorder %s381_s26, %s381_s26 }
   0x6   :  { %p388_p3 = por %p387_p2, %p386_p1 }
   0x8   :  { %p389_p4 = pnand %p388_p3, %p382_p0 }
   0xa   :  { %392 = shalt.err (!%p389_p4)
}
   0xb   :  { %s418_s27 = smov 128   ;;  %s419_s28 = smov 8  }
   0xc   :  { %27 = dma.hbm_to_vmem [thread:$0]  %s511_s1, 256, %s22_s25, [#allocation3], %s418_s27, %s418_s27, %s419_s28  }
   0xd   :  { %s420_s8 = smov [#allocation4]  }
   0xe   :  { %s38_s9 = sshll.u32 %s420_s8, 4  ;;  %s39_s9 = int_to_ptr.vmem [resolvable:$true] %s38_s9 }
   0xf   :  { %s401_s10 = scalar_lea.vmem %s39_s9, 16  ;;  %s405_s11 = scalar_lea.vmem %s39_s9, 32 }
  0x10   :  { %p402_p5 = scmp.ne.s32.totalorder %s39_s9, %s401_s10  ;;  %p406_p6 = scmp.lt.s32.totalorder %s39_s9, %s39_s9 }
  0x11   :  { %p407_p7 = scmp.lt.s32.totalorder %s405_s11, %s401_s10 }
  0x13   :  { %p408_p8 = por %p407_p7, %p406_p6 }
  0x15   :  { %p409_p9 = pnand %p408_p8, %p402_p5 }
  0x17   :  { %412 = shalt.err (!%p409_p9)
}
  0x18   :  { %41 = dma.hbm_to_vmem [thread:$0]  %s514_s4, 16, %s39_s9, [#allocation5]  }
  0x19   :  { %413 = dma.done.wait [#allocation3], 256  }
  0x1a   :  { %414 = vsyncadd [#allocation3], 4294967040 }
  0x1b   :  { %415 = dma.done.wait [#allocation5], 16  }
  0x1c   :  { %416 = vsyncadd [#allocation5], 4294967280  ;;  %v421_v0 = vmov 0.0   ;;  %vm422_vm0 = vmmov 0   ;;  %v54_v1 = vld [vmem:[#allocation2 + $0x8] sm:$0xff]  ;;  %v53_v2 = vld [vmem:[#allocation2] sm:$0xff] }
  0x1d   :  { %338 = vmatprep.subr.mxu0 %v421_v0  ;;  %342 = vmatprep.mubr.msk.f32.mxu0 %vm422_vm0, %v421_v0  ;;  %v52_v3 = vld [vmem:[%s510_s0] sm:$0xff]  ;;  %vm62_vm1 = vcmask 130048   ;;  %v142_v4 = vld [vmem:[%s513_s3 + $0x18] sm:$0xff]  ;;  %v141_v5 = vld [vmem:[%s513_s3 + $0x10] sm:$0xff]  ;;  %vm150_vm3 = vcmask 261120   ;;  %vm311_vm5 = vcmask 31744  }
  0x1e   :  { %345 = vmatprep.subr.mxu1 %v421_v0  ;;  %353 = vmatprep.mubr.msk.f32.mxu1 %vm422_vm0, %v421_v0  ;;  %v140_v6 = vld [vmem:[%s513_s3 + $0x8] sm:$0xff]  ;;  %v139_v7 = vld [vmem:[%s513_s3] sm:$0xff]  ;;  %v230_v8 = vld [vmem:[%s515_s5 + $0x18] sm:$0xff] }
  0x1f   :  { %339 = vmatpush3.msra.mxu0 %v54_v1  ;;  %346 = vmatpush3.msra.mxu1 %v142_v4  ;;  %v319_v9 = vld [vmem:[%s512_s2] ss:$0 sm:$0xff]  ;;  %v229_v15 = vld [vmem:[%s515_s5 + $0x10] sm:$0xff]  ;;  %v228_v16 = vld [vmem:[%s515_s5 + $0x8] sm:$0xff] }
  0x20   :  { %340 = vmatprep.subr.mxu0 %v421_v0  ;;  %347 = vmatprep.subr.mxu1 %v421_v0  ;;  %v227_v17 = vld [vmem:[%s515_s5] sm:$0xff]  ;;  %v321_v18 = vld [vmem:[#allocation4] ss:$0 sm:$0xff] }
  0x21   :  { %341 = vmatpush3.msra.mxu0 %v53_v2  ;;  %348 = vmatpush3.msra.mxu1 %v141_v5  ;;  %v323_v24 = vld [vmem:[%s516_s6] ss:$0 sm:$0xff] }
  0x22   :  { %343 = vmatmul.mubr.msk.f32.vlgmr.msra.gmra.mxu0 %vm62_vm1, %v52_v3  ;;  %356 = vmatprep.subr.mxu0 %v421_v0 }
  0x23   :  { %364 = vmatprep.mubr.msk.f32.mxu0 %vm422_vm0, %v421_v0  ;;  %349 = vmatprep.subr.mxu1 %v421_v0 }
  0x24   :  { %350 = vmatpush3.msra.mxu1 %v140_v6  ;;  %357 = vmatpush3.msra.mxu0 %v230_v8 }
  0x25   :  { %351 = vmatprep.subr.mxu1 %v421_v0  ;;  %358 = vmatprep.subr.mxu0 %v421_v0 }
  0x26   :  { %352 = vmatpush3.msra.mxu1 %v139_v7  ;;  %359 = vmatpush3.msra.mxu0 %v229_v15 }
  0x27   :  { %360 = vmatprep.subr.mxu0 %v421_v0 }
  0x28   :  { %361 = vmatpush3.msra.mxu0 %v228_v16 }
  0x29   :  { %362 = vmatprep.subr.mxu0 %v421_v0 }
  0x2a   :  { %363 = vmatpush3.msra.mxu0 %v227_v17 }
  0xe2   :  { %v132_v10 = vpop.f32.mrf.mxu0 }
  0xe3   :  { %v133_v11 = vadd.f32 %v319_v9, %v132_v10 }
  0xe4   :  { %v344_v12 = vpop.f32.mrf.mxu0 }
  0xe5   :  { %vm136_vm2 = vcmp.gt.f32.partialorder %v133_v11, 0.0  ;;  %v137_v13 = vmul.f32 0.001, %v133_v11 }
  0xe7   :  { %v138_v14 = vsel %vm136_vm2, %v133_v11, %v137_v13 }
  0xe8   :  { %354 = vmatmul.mubr.msk.f32.vlgmr.msra.gmra.mxu1 %vm150_vm3, %v138_v14 }
 0x1a8   :  { %v220_v19 = vpop.f32.mrf.mxu1 }
 0x1a9   :  { %v221_v20 = vadd.f32 %v321_v18, %v220_v19 }
 0x1aa   :  { %v355_v21 = vpop.f32.mrf.mxu1 }
 0x1ab   :  { %vm224_vm4 = vcmp.gt.f32.partialorder %v221_v20, 0.0  ;;  %v225_v22 = vmul.f32 0.001, %v221_v20 }
 0x1ad   :  { %v226_v23 = vsel %vm224_vm4, %v221_v20, %v225_v22 }
 0x1ae   :  { %365 = vmatmul.mubr.msk.f32.vlgmr.msra.gmra.mxu0 %vm150_vm3, %v226_v23 }
 0x26e   :  { %v307_v25 = vpop.f32.mrf.mxu0 }
 0x26f   :  { %v308_v26 = vadd.f32 %v323_v24, %v307_v25 }
 0x270   :  { %v366_v27 = vpop.f32.mrf.mxu0 }
 0x271   :  { %312 = vst.msk [vmem:[%s517_s7] sm:$0xff] %vm311_vm5, %v308_v26 }
 0x272   :  { %317 = vsyncpa [#allocation3], 1 }
 0x273   :  { %318 = vsyncpa [#allocation5], 1 }

</bundles_post_ra>
